<compile_context>
chip_gen: v7x
topology: tpu7x:2x2x1
jax: 0.10.0
libtpu: 0.0.40
codegen_flags: <defaults>
</compile_context>

<pallas_src>
import jax
import jax.numpy as jnp
from jax.experimental import pallas as pl
from jax.experimental.pallas import tpu as pltpu

INPUT_DIM = 28
OUTPUT_DIM = 21
LAYER_SIZE = 64
N_LAYERS = 12            # 11 hidden Linear+ReLU, 1 output Linear+Sigmoid

K_PAD = 128              # padded in-features  (full lane width)
N_PAD = 128              # padded out-features (full lane width)
BATCH_BLOCK_MAX = 1024   # rows per grid step for large batches


def _round_up(x, m):
    return ((x + m - 1) // m) * m


def mlp_kernel(x_ref, w_ref, b_ref, o_ref):
    # x_ref : (BB, N_PAD)                 f32 VMEM  (lanes >= INPUT_DIM are 0)
    # w_ref : (N_LAYERS, K_PAD, N_PAD)    f32 VMEM  (resident across grid steps)
    # b_ref : (N_LAYERS, 1, N_PAD)        f32 VMEM
    # o_ref : (BB, N_PAD)                 f32 VMEM
    h = x_ref[...]
    for l in range(N_LAYERS):                       # statically unrolled
        # Load each layer's weight tile directly from the ref inside the dot;
        # live ranges stay bounded by the serial data dependence through h.
        z = jnp.dot(h, w_ref[l], preferred_element_type=jnp.float32) + b_ref[l]
        if l < N_LAYERS - 1:
            h = jnp.maximum(z, 0.0)                 # Linear + ReLU
        else:
            o_ref[...] = 1.0 / (1.0 + jnp.exp(-z))  # Linear + exact Sigmoid


def pack_params(weights, biases):
    """Zero-pad & stack params ONCE (kept off the per-call forward path).

    weights[l]: (in_l, out_l)  (transpose of PyTorch's (out, in))
    biases[l]:  (out_l,)
    Returns (w_stack f32 (12,128,128), b_stack f32 (12,1,128)).
    """
    w_stack = jnp.zeros((N_LAYERS, K_PAD, N_PAD), jnp.float32)
    b_stack = jnp.zeros((N_LAYERS, 1, N_PAD), jnp.float32)
    for l in range(N_LAYERS):
        w, b = weights[l], biases[l]
        w_stack = w_stack.at[l, :w.shape[0], :w.shape[1]].set(w)
        b_stack = b_stack.at[l, 0, :b.shape[0]].set(b)
    return w_stack, b_stack


def mlp_forward(x, w_stack, b_stack):
    """x: (B, INPUT_DIM) f32. w_stack/b_stack: outputs of pack_params."""
    B = x.shape[0]
    # Cap the block so large batches split into >= 2 blocks (both v7x TCs);
    # tiny batches just round up to one small (multiple-of-8) block.
    bb = max(8, min(BATCH_BLOCK_MAX, _round_up(pl.cdiv(B, 2), 8)))
    b_pad = _round_up(B, bb)
    n_blocks = b_pad // bb

    # Pad inside the jitted wrapper so XLA fuses the pad with the kernel's
    # input DMA instead of materializing a (b_pad, 128) copy in HBM.
    x_pad = jnp.pad(x.astype(jnp.float32),
                    ((0, b_pad - B), (0, N_PAD - INPUT_DIM)))

    out_pad = pl.pallas_call(
        mlp_kernel,
        out_shape=jax.ShapeDtypeStruct((b_pad, N_PAD), jnp.float32),
        grid=(n_blocks,),
        in_specs=[
            pl.BlockSpec((bb, N_PAD), lambda i: (i, 0)),
            # Full weight stack, constant index_map -> fetched once,
            # VMEM-resident across all batch blocks.
            pl.BlockSpec((N_LAYERS, K_PAD, N_PAD), lambda i: (0, 0, 0)),
            pl.BlockSpec((N_LAYERS, 1, N_PAD), lambda i: (0, 0, 0)),
        ],
        out_specs=pl.BlockSpec((bb, N_PAD), lambda i: (i, 0)),
        compiler_params=pltpu.CompilerParams(
            dimension_semantics=("parallel",)),      # batch blocks -> both TCs
    )(x_pad, w_stack, b_stack)

    return out_pad[:B, :OUTPUT_DIM]


def init_params(key):
    """Deterministic init mirroring the PyTorch module's layer shapes."""
    dims = [INPUT_DIM] + [LAYER_SIZE] * (N_LAYERS - 1) + [OUTPUT_DIM]
    weights, biases = [], []
    for l in range(N_LAYERS):
        key, kw, kb = jax.random.split(key, 3)
        bound = 1.0 / jnp.sqrt(dims[l])
        w = jax.random.uniform(kw, (dims[l], dims[l + 1]),
                               minval=-bound, maxval=bound, dtype=jnp.float32)
        b = jax.random.uniform(kb, (dims[l + 1],),
                               minval=-bound, maxval=bound, dtype=jnp.float32)
        weights.append(w)
        biases.append(b)
    return weights, biases


def mlp_reference(x, weights, biases):
    """Pure-JAX f32 reference matching the PyTorch module's forward."""
    h = x.astype(jnp.float32)
    for l in range(N_LAYERS):
        z = h @ weights[l] + biases[l]
        h = jnp.maximum(z, 0.0) if l < N_LAYERS - 1 else jax.nn.sigmoid(z)
    return h


# TODO(synk): the dropout=True constructor path (nn.Dropout between layers) is
# not implemented; the default forward (dropout=False) is what this kernel maps.

if __name__ == "__main__":
    key = jax.random.PRNGKey(0)
    key, kx = jax.random.split(key)
    batch = 2
    x = jax.random.normal(kx, (batch, INPUT_DIM), dtype=jnp.float32)

    weights, biases = init_params(key)
    # Pack (pad + stack) ONCE, outside the per-call forward path.
    w_stack, b_stack = pack_params(weights, biases)
    w_stack = jax.block_until_ready(w_stack)
    b_stack = jax.block_until_ready(b_stack)

    fwd = jax.jit(mlp_forward)
    out = jax.block_until_ready(fwd(x, w_stack, b_stack))

    ref = mlp_reference(x, weights, biases)
    assert out.shape == (batch, OUTPUT_DIM)
    # Residual error vs. the pure-JAX f32 reference comes only from MXU
    # matmul pass decomposition / accumulation order; sigmoid outputs in [0,1].
    assert jnp.allclose(out, ref, atol=2e-3, rtol=2e-3)

    print("KERNEL_OK")
</pallas_src>

<mosaic_0001>
module attributes {stable_mosaic.version = 11 : i64} {
  func.func @mlp_kernel(%arg0: i32, %arg1: memref<8x128xf32, #tpu.memory_space<vmem>>, %arg2: memref<12x128x128xf32, #tpu.memory_space<vmem>>, %arg3: memref<12x1x128xf32, #tpu.memory_space<vmem>>, %arg4: memref<8x128xf32, #tpu.memory_space<vmem>>) attributes {dimension_semantics = [#tpu.dimension_semantics<parallel>], iteration_bounds = array<i64: 1>, scalar_prefetch = 0 : i64, scratch_operands = 0 : i64, tpu.core_type = #tpu.core_type<tc>, window_params = [{transform_indices = @transform_0, window_bounds = array<i64: 8, 128>}, {pipeline_mode = #tpu.pipeline_mode<synchronous>, transform_indices = @transform_1, window_bounds = array<i64: 12, 128, 128>}, {pipeline_mode = #tpu.pipeline_mode<synchronous>, transform_indices = @transform_2, window_bounds = array<i64: 12, 1, 128>}, {transform_indices = @transform_3, window_bounds = array<i64: 8, 128>}]} {
    %c0 = arith.constant 0 : index
    %c0_0 = arith.constant 0 : index
    %0 = vector.load %arg1[%c0, %c0_0] : memref<8x128xf32, #tpu.memory_space<vmem>>, vector<8x128xf32>
    %c0_1 = arith.constant 0 : index
    %c0_2 = arith.constant 0 : index
    %c0_3 = arith.constant 0 : index
    %1 = vector.load %arg2[%c0_1, %c0_2, %c0_3] : memref<12x128x128xf32, #tpu.memory_space<vmem>>, vector<1x128x128xf32>
    %2 = vector.shape_cast %1 : vector<1x128x128xf32> to vector<128x128xf32>
    %cst = arith.constant dense<0.000000e+00> : vector<8x128xf32>
    %3 = tpu.matmul %0, %2, %cst {dimension_numbers = #tpu.dot_dimension_numbers<[1], [0], [0], [1], [0, 0, 1, 1], [], []>} : vector<8x128xf32>, vector<128x128xf32>, vector<8x128xf32> -> vector<8x128xf32>
    %c0_4 = arith.constant 0 : index
    %c0_5 = arith.constant 0 : index
    %c0_6 = arith.constant 0 : index
    %4 = vector.load %arg3[%c0_4, %c0_5, %c0_6] : memref<12x1x128xf32, #tpu.memory_space<vmem>>, vector<1x1x128xf32>
    %5 = vector.shape_cast %4 : vector<1x1x128xf32> to vector<1x128xf32>
    %6 = vector.broadcast %5 : vector<1x128xf32> to vector<8x128xf32>
    %7 = arith.addf %3, %6 : vector<8x128xf32>
    %cst_7 = arith.constant 0.000000e+00 : f32
    %8 = vector.broadcast %cst_7 : f32 to vector<8x128xf32>
    %9 = arith.maximumf %7, %8 : vector<8x128xf32>
    %c1 = arith.constant 1 : index
    %c0_8 = arith.constant 0 : index
    %c0_9 = arith.constant 0 : index
    %10 = vector.load %arg2[%c1, %c0_8, %c0_9] : memref<12x128x128xf32, #tpu.memory_space<vmem>>, vector<1x128x128xf32>
    %11 = vector.shape_cast %10 : vector<1x128x128xf32> to vector<128x128xf32>
    %cst_10 = arith.constant dense<0.000000e+00> : vector<8x128xf32>
    %12 = tpu.matmul %9, %11, %cst_10 {dimension_numbers = #tpu.dot_dimension_numbers<[1], [0], [0], [1], [0, 0, 1, 1], [], []>} : vector<8x128xf32>, vector<128x128xf32>, vector<8x128xf32> -> vector<8x128xf32>
    %c1_11 = arith.constant 1 : index
    %c0_12 = arith.constant 0 : index
    %c0_13 = arith.constant 0 : index
    %13 = vector.load %arg3[%c1_11, %c0_12, %c0_13] : memref<12x1x128xf32, #tpu.memory_space<vmem>>, vector<1x1x128xf32>
    %14 = vector.shape_cast %13 : vector<1x1x128xf32> to vector<1x128xf32>
    %15 = vector.broadcast %14 : vector<1x128xf32> to vector<8x128xf32>
    %16 = arith.addf %12, %15 : vector<8x128xf32>
    %cst_14 = arith.constant 0.000000e+00 : f32
    %17 = vector.broadcast %cst_14 : f32 to vector<8x128xf32>
    %18 = arith.maximumf %16, %17 : vector<8x128xf32>
    %c2 = arith.constant 2 : index
    %c0_15 = arith.constant 0 : index
    %c0_16 = arith.constant 0 : index
    %19 = vector.load %arg2[%c2, %c0_15, %c0_16] : memref<12x128x128xf32, #tpu.memory_space<vmem>>, vector<1x128x128xf32>
    %20 = vector.shape_cast %19 : vector<1x128x128xf32> to vector<128x128xf32>
    %cst_17 = arith.constant dense<0.000000e+00> : vector<8x128xf32>
    %21 = tpu.matmul %18, %20, %cst_17 {dimension_numbers = #tpu.dot_dimension_numbers<[1], [0], [0], [1], [0, 0, 1, 1], [], []>} : vector<8x128xf32>, vector<128x128xf32>, vector<8x128xf32> -> vector<8x128xf32>
    %c2_18 = arith.constant 2 : index
    %c0_19 = arith.constant 0 : index
    %c0_20 = arith.constant 0 : index
    %22 = vector.load %arg3[%c2_18, %c0_19, %c0_20] : memref<12x1x128xf32, #tpu.memory_space<vmem>>, vector<1x1x128xf32>
    %23 = vector.shape_cast %22 : vector<1x1x128xf32> to vector<1x128xf32>
    %24 = vector.broadcast %23 : vector<1x128xf32> to vector<8x128xf32>
    %25 = arith.addf %21, %24 : vector<8x128xf32>
    %cst_21 = arith.constant 0.000000e+00 : f32
    %26 = vector.broadcast %cst_21 : f32 to vector<8x128xf32>
    %27 = arith.maximumf %25, %26 : vector<8x128xf32>
    %c3 = arith.constant 3 : index
    %c0_22 = arith.constant 0 : index
    %c0_23 = arith.constant 0 : index
    %28 = vector.load %arg2[%c3, %c0_22, %c0_23] : memref<12x128x128xf32, #tpu.memory_space<vmem>>, vector<1x128x128xf32>
    %29 = vector.shape_cast %28 : vector<1x128x128xf32> to vector<128x128xf32>
    %cst_24 = arith.constant dense<0.000000e+00> : vector<8x128xf32>
    %30 = tpu.matmul %27, %29, %cst_24 {dimension_numbers = #tpu.dot_dimension_numbers<[1], [0], [0], [1], [0, 0, 1, 1], [], []>} : vector<8x128xf32>, vector<128x128xf32>, vector<8x128xf32> -> vector<8x128xf32>
    %c3_25 = arith.constant 3 : index
    %c0_26 = arith.constant 0 : index
    %c0_27 = arith.constant 0 : index
    %31 = vector.load %arg3[%c3_25, %c0_26, %c0_27] : memref<12x1x128xf32, #tpu.memory_space<vmem>>, vector<1x1x128xf32>
    %32 = vector.shape_cast %31 : vector<1x1x128xf32> to vector<1x128xf32>
    %33 = vector.broadcast %32 : vector<1x128xf32> to vector<8x128xf32>
    %34 = arith.addf %30, %33 : vector<8x128xf32>
    %cst_28 = arith.constant 0.000000e+00 : f32
    %35 = vector.broadcast %cst_28 : f32 to vector<8x128xf32>
    %36 = arith.maximumf %34, %35 : vector<8x128xf32>
    %c4 = arith.constant 4 : index
    %c0_29 = arith.constant 0 : index
    %c0_30 = arith.constant 0 : index
    %37 = vector.load %arg2[%c4, %c0_29, %c0_30] : memref<12x128x128xf32, #tpu.memory_space<vmem>>, vector<1x128x128xf32>
    %38 = vector.shape_cast %37 : vector<1x128x128xf32> to vector<128x128xf32>
    %cst_31 = arith.constant dense<0.000000e+00> : vector<8x128xf32>
    %39 = tpu.matmul %36, %38, %cst_31 {dimension_numbers = #tpu.dot_dimension_numbers<[1], [0], [0], [1], [0, 0, 1, 1], [], []>} : vector<8x128xf32>, vector<128x128xf32>, vector<8x128xf32> -> vector<8x128xf32>
    %c4_32 = arith.constant 4 : index
    %c0_33 = arith.constant 0 : index
    %c0_34 = arith.constant 0 : index
    %40 = vector.load %arg3[%c4_32, %c0_33, %c0_34] : memref<12x1x128xf32, #tpu.memory_space<vmem>>, vector<1x1x128xf32>
    %41 = vector.shape_cast %40 : vector<1x1x128xf32> to vector<1x128xf32>
    %42 = vector.broadcast %41 : vector<1x128xf32> to vector<8x128xf32>
    %43 = arith.addf %39, %42 : vector<8x128xf32>
    %cst_35 = arith.constant 0.000000e+00 : f32
    %44 = vector.broadcast %cst_35 : f32 to vector<8x128xf32>
    %45 = arith.maximumf %43, %44 : vector<8x128xf32>
    %c5 = arith.constant 5 : index
    %c0_36 = arith.constant 0 : index
    %c0_37 = arith.constant 0 : index
    %46 = vector.load %arg2[%c5, %c0_36, %c0_37] : memref<12x128x128xf32, #tpu.memory_space<vmem>>, vector<1x128x128xf32>
    %47 = vector.shape_cast %46 : vector<1x128x128xf32> to vector<128x128xf32>
    %cst_38 = arith.constant dense<0.000000e+00> : vector<8x128xf32>
    %48 = tpu.matmul %45, %47, %cst_38 {dimension_numbers = #tpu.dot_dimension_numbers<[1], [0], [0], [1], [0, 0, 1, 1], [], []>} : vector<8x128xf32>, vector<128x128xf32>, vector<8x128xf32> -> vector<8x128xf32>
    %c5_39 = arith.constant 5 : index
    %c0_40 = arith.constant 0 : index
    %c0_41 = arith.constant 0 : index
    %49 = vector.load %arg3[%c5_39, %c0_40, %c0_41] : memref<12x1x128xf32, #tpu.memory_space<vmem>>, vector<1x1x128xf32>
    %50 = vector.shape_cast %49 : vector<1x1x128xf32> to vector<1x128xf32>
    %51 = vector.broadcast %50 : vector<1x128xf32> to vector<8x128xf32>
    %52 = arith.addf %48, %51 : vector<8x128xf32>
    %cst_42 = arith.constant 0.000000e+00 : f32
    %53 = vector.broadcast %cst_42 : f32 to vector<8x128xf32>
    %54 = arith.maximumf %52, %53 : vector<8x128xf32>
    %c6 = arith.constant 6 : index
    %c0_43 = arith.constant 0 : index
    %c0_44 = arith.constant 0 : index
    %55 = vector.load %arg2[%c6, %c0_43, %c0_44] : memref<12x128x128xf32, #tpu.memory_space<vmem>>, vector<1x128x128xf32>
    %56 = vector.shape_cast %55 : vector<1x128x128xf32> to vector<128x128xf32>
    %cst_45 = arith.constant dense<0.000000e+00> : vector<8x128xf32>
    %57 = tpu.matmul %54, %56, %cst_45 {dimension_numbers = #tpu.dot_dimension_numbers<[1], [0], [0], [1], [0, 0, 1, 1], [], []>} : vector<8x128xf32>, vector<128x128xf32>, vector<8x128xf32> -> vector<8x128xf32>
    %c6_46 = arith.constant 6 : index
    %c0_47 = arith.constant 0 : index
    %c0_48 = arith.constant 0 : index
    %58 = vector.load %arg3[%c6_46, %c0_47, %c0_48] : memref<12x1x128xf32, #tpu.memory_space<vmem>>, vector<1x1x128xf32>
    %59 = vector.shape_cast %58 : vector<1x1x128xf32> to vector<1x128xf32>
    %60 = vector.broadcast %59 : vector<1x128xf32> to vector<8x128xf32>
    %61 = arith.addf %57, %60 : vector<8x128xf32>
    %cst_49 = arith.constant 0.000000e+00 : f32
    %62 = vector.broadcast %cst_49 : f32 to vector<8x128xf32>
    %63 = arith.maximumf %61, %62 : vector<8x128xf32>
    %c7 = arith.constant 7 : index
    %c0_50 = arith.constant 0 : index
    %c0_51 = arith.constant 0 : index
    %64 = vector.load %arg2[%c7, %c0_50, %c0_51] : memref<12x128x128xf32, #tpu.memory_space<vmem>>, vector<1x128x128xf32>
    %65 = vector.shape_cast %64 : vector<1x128x128xf32> to vector<128x128xf32>
    %cst_52 = arith.constant dense<0.000000e+00> : vector<8x128xf32>
    %66 = tpu.matmul %63, %65, %cst_52 {dimension_numbers = #tpu.dot_dimension_numbers<[1], [0], [0], [1], [0, 0, 1, 1], [], []>} : vector<8x128xf32>, vector<128x128xf32>, vector<8x128xf32> -> vector<8x128xf32>
    %c7_53 = arith.constant 7 : index
    %c0_54 = arith.constant 0 : index
    %c0_55 = arith.constant 0 : index
    %67 = vector.load %arg3[%c7_53, %c0_54, %c0_55] : memref<12x1x128xf32, #tpu.memory_space<vmem>>, vector<1x1x128xf32>
    %68 = vector.shape_cast %67 : vector<1x1x128xf32> to vector<1x128xf32>
    %69 = vector.broadcast %68 : vector<1x128xf32> to vector<8x128xf32>
    %70 = arith.addf %66, %69 : vector<8x128xf32>
    %cst_56 = arith.constant 0.000000e+00 : f32
    %71 = vector.broadcast %cst_56 : f32 to vector<8x128xf32>
    %72 = arith.maximumf %70, %71 : vector<8x128xf32>
    %c8 = arith.constant 8 : index
    %c0_57 = arith.constant 0 : index
    %c0_58 = arith.constant 0 : index
    %73 = vector.load %arg2[%c8, %c0_57, %c0_58] : memref<12x128x128xf32, #tpu.memory_space<vmem>>, vector<1x128x128xf32>
    %74 = vector.shape_cast %73 : vector<1x128x128xf32> to vector<128x128xf32>
    %cst_59 = arith.constant dense<0.000000e+00> : vector<8x128xf32>
    %75 = tpu.matmul %72, %74, %cst_59 {dimension_numbers = #tpu.dot_dimension_numbers<[1], [0], [0], [1], [0, 0, 1, 1], [], []>} : vector<8x128xf32>, vector<128x128xf32>, vector<8x128xf32> -> vector<8x128xf32>
    %c8_60 = arith.constant 8 : index
    %c0_61 = arith.constant 0 : index
    %c0_62 = arith.constant 0 : index
    %76 = vector.load %arg3[%c8_60, %c0_61, %c0_62] : memref<12x1x128xf32, #tpu.memory_space<vmem>>, vector<1x1x128xf32>
    %77 = vector.shape_cast %76 : vector<1x1x128xf32> to vector<1x128xf32>
    %78 = vector.broadcast %77 : vector<1x128xf32> to vector<8x128xf32>
    %79 = arith.addf %75, %78 : vector<8x128xf32>
    %cst_63 = arith.constant 0.000000e+00 : f32
    %80 = vector.broadcast %cst_63 : f32 to vector<8x128xf32>
    %81 = arith.maximumf %79, %80 : vector<8x128xf32>
    %c9 = arith.constant 9 : index
    %c0_64 = arith.constant 0 : index
    %c0_65 = arith.constant 0 : index
    %82 = vector.load %arg2[%c9, %c0_64, %c0_65] : memref<12x128x128xf32, #tpu.memory_space<vmem>>, vector<1x128x128xf32>
    %83 = vector.shape_cast %82 : vector<1x128x128xf32> to vector<128x128xf32>
    %cst_66 = arith.constant dense<0.000000e+00> : vector<8x128xf32>
    %84 = tpu.matmul %81, %83, %cst_66 {dimension_numbers = #tpu.dot_dimension_numbers<[1], [0], [0], [1], [0, 0, 1, 1], [], []>} : vector<8x128xf32>, vector<128x128xf32>, vector<8x128xf32> -> vector<8x128xf32>
    %c9_67 = arith.constant 9 : index
    %c0_68 = arith.constant 0 : index
    %c0_69 = arith.constant 0 : index
    %85 = vector.load %arg3[%c9_67, %c0_68, %c0_69] : memref<12x1x128xf32, #tpu.memory_space<vmem>>, vector<1x1x128xf32>
    %86 = vector.shape_cast %85 : vector<1x1x128xf32> to vector<1x128xf32>
    %87 = vector.broadcast %86 : vector<1x128xf32> to vector<8x128xf32>
    %88 = arith.addf %84, %87 : vector<8x128xf32>
    %cst_70 = arith.constant 0.000000e+00 : f32
    %89 = vector.broadcast %cst_70 : f32 to vector<8x128xf32>
    %90 = arith.maximumf %88, %89 : vector<8x128xf32>
    %c10 = arith.constant 10 : index
    %c0_71 = arith.constant 0 : index
    %c0_72 = arith.constant 0 : index
    %91 = vector.load %arg2[%c10, %c0_71, %c0_72] : memref<12x128x128xf32, #tpu.memory_space<vmem>>, vector<1x128x128xf32>
    %92 = vector.shape_cast %91 : vector<1x128x128xf32> to vector<128x128xf32>
    %cst_73 = arith.constant dense<0.000000e+00> : vector<8x128xf32>
    %93 = tpu.matmul %90, %92, %cst_73 {dimension_numbers = #tpu.dot_dimension_numbers<[1], [0], [0], [1], [0, 0, 1, 1], [], []>} : vector<8x128xf32>, vector<128x128xf32>, vector<8x128xf32> -> vector<8x128xf32>
    %c10_74 = arith.constant 10 : index
    %c0_75 = arith.constant 0 : index
    %c0_76 = arith.constant 0 : index
    %94 = vector.load %arg3[%c10_74, %c0_75, %c0_76] : memref<12x1x128xf32, #tpu.memory_space<vmem>>, vector<1x1x128xf32>
    %95 = vector.shape_cast %94 : vector<1x1x128xf32> to vector<1x128xf32>
    %96 = vector.broadcast %95 : vector<1x128xf32> to vector<8x128xf32>
    %97 = arith.addf %93, %96 : vector<8x128xf32>
    %cst_77 = arith.constant 0.000000e+00 : f32
    %98 = vector.broadcast %cst_77 : f32 to vector<8x128xf32>
    %99 = arith.maximumf %97, %98 : vector<8x128xf32>
    %c11 = arith.constant 11 : index
    %c0_78 = arith.constant 0 : index
    %c0_79 = arith.constant 0 : index
    %100 = vector.load %arg2[%c11, %c0_78, %c0_79] : memref<12x128x128xf32, #tpu.memory_space<vmem>>, vector<1x128x128xf32>
    %101 = vector.shape_cast %100 : vector<1x128x128xf32> to vector<128x128xf32>
    %cst_80 = arith.constant dense<0.000000e+00> : vector<8x128xf32>
    %102 = tpu.matmul %99, %101, %cst_80 {dimension_numbers = #tpu.dot_dimension_numbers<[1], [0], [0], [1], [0, 0, 1, 1], [], []>} : vector<8x128xf32>, vector<128x128xf32>, vector<8x128xf32> -> vector<8x128xf32>
    %c11_81 = arith.constant 11 : index
    %c0_82 = arith.constant 0 : index
    %c0_83 = arith.constant 0 : index
    %103 = vector.load %arg3[%c11_81, %c0_82, %c0_83] : memref<12x1x128xf32, #tpu.memory_space<vmem>>, vector<1x1x128xf32>
    %104 = vector.shape_cast %103 : vector<1x1x128xf32> to vector<1x128xf32>
    %105 = vector.broadcast %104 : vector<1x128xf32> to vector<8x128xf32>
    %106 = arith.addf %102, %105 : vector<8x128xf32>
    %cst_84 = arith.constant 0.000000e+00 : f32
    %107 = vector.broadcast %cst_84 : f32 to vector<8x128xf32>
    %108 = arith.subf %107, %106 : vector<8x128xf32>
    %109 = math.exp %108 : vector<8x128xf32>
    %cst_85 = arith.constant 1.000000e+00 : f32
    %110 = vector.broadcast %cst_85 : f32 to vector<8x128xf32>
    %111 = arith.addf %110, %109 : vector<8x128xf32>
    %cst_86 = arith.constant 1.000000e+00 : f32
    %112 = vector.broadcast %cst_86 : f32 to vector<8x128xf32>
    %113 = arith.divf %112, %111 : vector<8x128xf32>
    %c0_87 = arith.constant 0 : index
    %c0_88 = arith.constant 0 : index
    %114 = vector.load %arg4[%c0_87, %c0_88] : memref<8x128xf32, #tpu.memory_space<vmem>>, vector<8x128xf32>
    tpu.vector_store %arg4[%c0_87, %c0_88], %113 {strides = array<i32>} : memref<8x128xf32, #tpu.memory_space<vmem>>, vector<8x128xf32>,
    return
  }
  func.func @transform_0(%arg0: i32) -> (i32, i32) {
    %c0_i32 = arith.constant 0 : i32
    %c0_i32_0 = arith.constant 0 : i32
    return %arg0, %c0_i32 : i32, i32
  }
  func.func @transform_1(%arg0: i32) -> (i32, i32, i32) {
    %c0_i32 = arith.constant 0 : i32
    %c0_i32_0 = arith.constant 0 : i32
    %c0_i32_1 = arith.constant 0 : i32
    %c0_i32_2 = arith.constant 0 : i32
    return %c0_i32, %c0_i32_0, %c0_i32_1 : i32, i32, i32
  }
  func.func @transform_2(%arg0: i32) -> (i32, i32, i32) {
    %c0_i32 = arith.constant 0 : i32
    %c0_i32_0 = arith.constant 0 : i32
    %c0_i32_1 = arith.constant 0 : i32
    %c0_i32_2 = arith.constant 0 : i32
    return %c0_i32, %c0_i32_0, %c0_i32_1 : i32, i32, i32
  }
  func.func @transform_3(%arg0: i32) -> (i32, i32) {
    %c0_i32 = arith.constant 0 : i32
    %c0_i32_0 = arith.constant 0 : i32
    return %arg0, %c0_i32 : i32, i32
  }
}

</mosaic_0001>

<bundles_post_ra>
// kernel: mlp_forward.1
= control target key start
LH: loop header
LB: loop body
LE: loop exit
PB: predicated region body
PF: predicated region fallthrough
CT: control target
= control target key end

     0   :  { %8 = vsyncpa [#allocation3], 0  ;;  %s2159_s12 = smov [#allocation2]   ;;  %s2359_s0 = inlined_call_operand.vmem [shape: f32[8,128], index: 0, kind: input, shape index: {}]   ;;  %s2360_s1 = inlined_call_operand.hbm [shape: f32[12,128,128], index: 1, kind: input, shape index: {}]   ;;  %s2361_s2 = inlined_call_operand.vmem [shape: f32[12,1,128], index: 2, kind: input, shape index: {}]   ;;  %s2362_s3 = inlined_call_operand.vmem [shape: f32[8,128], index: 3, kind: output, shape index: {}]  }
   0x1   :  { %s16_s13 = sshll.u32 %s2159_s12, 4  ;;  %s2135_s16 = scalar_lea.hbm %s2360_s1, 24576  ;;  %s17_s13 = int_to_ptr.vmem [resolvable:$true] %s16_s13 }
   0x2   :  { %p2136_p0 = scmp.ne.s32.totalorder %s2360_s1, %s2135_s16  ;;  %p2139_p1 = scmp.lt.u32.totalorder %s2135_s16, %s2360_s1 }
   0x4   :  { %p2141_p2 = pnand %p2139_p1, %p2136_p0 }
   0x6   :  { %2144 = shalt.err (!%p2141_p2)
}
   0x7   :  { %s2145_s21 = scalar_lea.vmem %s17_s13, 24576  ;;  %p2150_p4 = scmp.lt.s32.totalorder %s17_s13, %s17_s13 }
   0x8   :  { %p2146_p3 = scmp.ne.s32.totalorder %s17_s13, %s2145_s21  ;;  %p2151_p5 = scmp.lt.s32.totalorder %s2145_s21, %s2145_s21 }
   0xa   :  { %p2152_p6 = por %p2151_p5, %p2150_p4 }
   0xc   :  { %p2153_p7 = pnand %p2152_p6, %p2146_p3 }
   0xe   :  { %2156 = shalt.err (!%p2153_p7)
}
   0xf   :  { %s2160_s22 = smov 128   ;;  %s2161_s23 = smov 8  }
  0x10   :  { %22 = dma.hbm_to_vmem [thread:$0]  %s2360_s1, 24576, %s17_s13, [#allocation3], %s2160_s22, %s2160_s22, %s2161_s23  }
  0x11   :  { %2157 = dma.done.wait [#allocation3], 24576  }
  0x12   :  { %2158 = vsyncadd [#allocation3], 4294942720  ;;  %v2162_v0 = vmov 0.0|0.0   ;;  %vm2163_vm0 = vmmov 0   ;;  %v2164_v1 = vmov 0.0   ;;  %v29_v2 = vld [vmem:[#allocation2] sm:$0xff] }
  0x13   :  { %1837 = vmatprep.subr.bf16.mxu0 %v2162_v0  ;;  %1449 = vmatprep.mubr.msk.f32.mxu0 %vm2163_vm0, %v2164_v1  ;;  %v30_v3 = vld [vmem:[#allocation2 + $0x8] sm:$0xff]  ;;  %v31_v4 = vld [vmem:[#allocation2 + $0x10] sm:$0xff]  ;;  %v32_v6 = vld [vmem:[#allocation2 + $0x18] sm:$0xff] }
  0x14   :  { %1861 = vmatprep.subr.bf16.mxu1 %v2162_v0  ;;  %1484 = vmatprep.mubr.msk.f32.mxu1 %vm2163_vm0, %v2164_v1  ;;  %v1838_v5 = vpack.c.bf16 %v30_v3, %v29_v2  ;;  %v1841_v7 = vpack.c.bf16 %v32_v6, %v31_v4  ;;  %v33_v8 = vld [vmem:[#allocation2 + $0x20] sm:$0xff]  ;;  %v34_v9 = vld [vmem:[#allocation2 + $0x28] sm:$0xff]  ;;  %v126_v12 = vld [vmem:[#allocation2 + $0x90] sm:$0xff] }
  0x15   :  { %v124_v10 = vld [vmem:[#allocation2 + $0x80] sm:$0xff]  ;;  %v125_v11 = vld [vmem:[#allocation2 + $0x88] sm:$0xff]  ;;  %v127_v13 = vld [vmem:[#allocation2 + $0x98] sm:$0xff]  ;;  %v1844_v14 = vpack.c.bf16 %v34_v9, %v33_v8 }
  0x16   :  { %1839 = vmatpush3.bf16.msra.mxu0 %v1838_v5  ;;  %v1862_v15 = vpack.c.bf16 %v125_v11, %v124_v10  ;;  %v35_v16 = vld [vmem:[#allocation2 + $0x30] sm:$0xff]  ;;  %v36_v17 = vld [vmem:[#allocation2 + $0x38] sm:$0xff]  ;;  %v1865_v18 = vpack.c.bf16 %v127_v13, %v126_v12  ;;  %v128_v19 = vld [vmem:[#allocation2 + $0xa0] sm:$0xff] }
  0x17   :  { %1840 = vmatprep.subr.bf16.mxu0 %v2162_v0  ;;  %v129_v20 = vld [vmem:[#allocation2 + $0xa8] sm:$0xff]  ;;  %v1847_v21 = vpack.c.bf16 %v36_v17, %v35_v16  ;;  %v37_v22 = vld [vmem:[#allocation2 + $0x40] sm:$0xff]  ;;  %v130_v25 = vld [vmem:[#allocation2 + $0xb0] sm:$0xff] }
  0x18   :  { %1863 = vmatpush3.bf16.msra.mxu1 %v1862_v15  ;;  %v38_v23 = vld [vmem:[#allocation2 + $0x48] sm:$0xff]  ;;  %v1868_v24 = vpack.c.bf16 %v129_v20, %v128_v19  ;;  %v131_v26 = vld [vmem:[#allocation2 + $0xb8] sm:$0xff]  ;;  %v39_v28 = vld [vmem:[#allocation2 + $0x50] sm:$0xff] }
  0x19   :  { %1864 = vmatprep.subr.bf16.mxu1 %v2162_v0  ;;  %v1850_v27 = vpack.c.bf16 %v38_v23, %v37_v22  ;;  %v40_v29 = vld [vmem:[#allocation2 + $0x58] sm:$0xff]  ;;  %v1871_v30 = vpack.c.bf16 %v131_v26, %v130_v25  ;;  %v132_v31 = vld [vmem:[#allocation2 + $0xc0] sm:$0xff]  ;;  %v133_v32 = vld [vmem:[#allocation2 + $0xc8] sm:$0xff] }
  0x1a   :  { %1842 = vmatpush3.bf16.msra.mxu0 %v1841_v7  ;;  %v1853_v33 = vpack.c.bf16 %v40_v29, %v39_v28  ;;  %v41_v34 = vld [vmem:[#allocation2 + $0x60] sm:$0xff]  ;;  %v42_v35 = vld [vmem:[#allocation2 + $0x68] sm:$0xff]  ;;  %v1874_v36 = vpack.c.bf16 %v133_v32, %v132_v31  ;;  %v134_v37 = vld [vmem:[#allocation2 + $0xd0] sm:$0xff] }
  0x1b   :  { %1843 = vmatprep.subr.bf16.mxu0 %v2162_v0  ;;  %v135_v38 = vld [vmem:[#allocation2 + $0xd8] sm:$0xff]  ;;  %v1856_v39 = vpack.c.bf16 %v42_v35, %v41_v34  ;;  %v43_v40 = vld [vmem:[#allocation2 + $0x70] sm:$0xff]  ;;  %v136_v43 = vld [vmem:[#allocation2 + $0xe0] sm:$0xff] }
  0x1c   :  { %1866 = vmatpush3.bf16.msra.mxu1 %v1865_v18  ;;  %v44_v41 = vld [vmem:[#allocation2 + $0x78] sm:$0xff]  ;;  %v1877_v42 = vpack.c.bf16 %v135_v38, %v134_v37  ;;  %v137_v44 = vld [vmem:[#allocation2 + $0xe8] sm:$0xff]  ;;  %v28_v47 = vld [vmem:[%s2359_s0] sm:$0xff] }
  0x1d   :  { %1867 = vmatprep.subr.bf16.mxu1 %v2162_v0  ;;  %v1859_v45 = vpack.c.bf16 %v44_v41, %v43_v40  ;;  %v1880_v46 = vpack.c.bf16 %v137_v44, %v136_v43  ;;  %v138_v48 = vld [vmem:[#allocation2 + $0xf0] sm:$0xff]  ;;  %v139_v49 = vld [vmem:[#allocation2 + $0xf8] sm:$0xff]  ;;  %v220_v51 = vld [vmem:[#allocation2 + $0x100] sm:$0xff] }
  0x1e   :  { %1845 = vmatpush3.bf16.msra.mxu0 %v1844_v14  ;;  %v1883_v50 = vpack.c.bf16 %v139_v49, %v138_v48  ;;  %v221_v52 = vld [vmem:[#allocation2 + $0x108] sm:$0xff]  ;;  %v222_v53 = vld [vmem:[#allocation2 + $0x110] sm:$0xff]  ;;  %v223_v55 = vld [vmem:[#allocation2 + $0x118] sm:$0xff] }
  0x1f   :  { %1846 = vmatprep.subr.bf16.mxu0 %v2162_v0  ;;  %v1886_v54 = vpack.c.bf16 %v221_v52, %v220_v51  ;;  %v1889_v56 = vpack.c.bf16 %v223_v55, %v222_v53  ;;  %v224_v57 = vld [vmem:[#allocation2 + $0x120] sm:$0xff]  ;;  %v225_v58 = vld [vmem:[#allocation2 + $0x128] sm:$0xff]  ;;  %v226_v60 = vld [vmem:[#allocation2 + $0x130] sm:$0xff] }
  0x20   :  { %1869 = vmatpush3.bf16.msra.mxu1 %v1868_v24  ;;  %v1892_v59 = vpack.c.bf16 %v225_v58, %v224_v57  ;;  %v227_v61 = vld [vmem:[#allocation2 + $0x138] sm:$0xff]  ;;  %v228_v63 = vld [vmem:[#allocation2 + $0x140] sm:$0xff]  ;;  %v229_v2 = vld [vmem:[#allocation2 + $0x148] sm:$0xff] }
  0x21   :  { %1870 = vmatprep.subr.bf16.mxu1 %v2162_v0  ;;  %v1895_v62 = vpack.c.bf16 %v227_v61, %v226_v60  ;;  %v1898_v3 = vpack.c.bf16 %v229_v2, %v228_v63  ;;  %v230_v4 = vld [vmem:[#allocation2 + $0x150] sm:$0xff]  ;;  %v231_v5 = vld [vmem:[#allocation2 + $0x158] sm:$0xff]  ;;  %v232_v7 = vld [vmem:[#allocation2 + $0x160] sm:$0xff] }
  0x22   :  { %1848 = vmatpush3.bf16.msra.mxu0 %v1847_v21  ;;  %v1901_v6 = vpack.c.bf16 %v231_v5, %v230_v4  ;;  %v233_v8 = vld [vmem:[#allocation2 + $0x168] sm:$0xff]  ;;  %v1190_v10 = vld [vmem:[%s2361_s2] ss:$0 sm:$0xff]  ;;  %v235_v16 = vld [vmem:[#allocation2 + $0x178] sm:$0xff] }
  0x23   :  { %1849 = vmatprep.subr.bf16.mxu0 %v2162_v0  ;;  %v1904_v9 = vpack.c.bf16 %v233_v8, %v232_v7  ;;  %v234_v15 = vld [vmem:[#allocation2 + $0x170] sm:$0xff]  ;;  %v316_v18 = vld [vmem:[#allocation2 + $0x180] sm:$0xff]  ;;  %v317_v19 = vld [vmem:[#allocation2 + $0x188] sm:$0xff] }
  0x24   :  { %1872 = vmatpush3.bf16.msra.mxu1 %v1871_v30  ;;  %v1907_v17 = vpack.c.bf16 %v235_v16, %v234_v15  ;;  %v318_v20 = vld [vmem:[#allocation2 + $0x190] sm:$0xff]  ;;  %v1910_v21 = vpack.c.bf16 %v317_v19, %v316_v18  ;;  %v319_v22 = vld [vmem:[#allocation2 + $0x198] sm:$0xff]  ;;  %v320_v24 = vld [vmem:[#allocation2 + $0x1a0] sm:$0xff] }
  0x25   :  { %1873 = vmatprep.subr.bf16.mxu1 %v2162_v0  ;;  %v1913_v23 = vpack.c.bf16 %v319_v22, %v318_v20  ;;  %v321_v25 = vld [vmem:[#allocation2 + $0x1a8] sm:$0xff]  ;;  %v323_v28 = vld [vmem:[#allocation2 + $0x1b8] sm:$0xff]  ;;  %v324_v30 = vld [vmem:[#allocation2 + $0x1c0] sm:$0xff] }
  0x26   :  { %1851 = vmatpush3.bf16.msra.mxu0 %v1850_v27  ;;  %v1916_v26 = vpack.c.bf16 %v321_v25, %v320_v24  ;;  %v322_v27 = vld [vmem:[#allocation2 + $0x1b0] sm:$0xff]  ;;  %v325_v31 = vld [vmem:[#allocation2 + $0x1c8] sm:$0xff]  ;;  %v327_v34 = vld [vmem:[#allocation2 + $0x1d8] sm:$0xff] }
  0x27   :  { %1852 = vmatprep.subr.bf16.mxu0 %v2162_v0  ;;  %v1919_v29 = vpack.c.bf16 %v323_v28, %v322_v27  ;;  %v1922_v32 = vpack.c.bf16 %v325_v31, %v324_v30  ;;  %v329_v37 = vld [vmem:[#allocation2 + $0x1e8] sm:$0xff]  ;;  %v330_v44 = vld [vmem:[#allocation2 + $0x1f0] sm:$0xff]  ;;  %v415_v51 = vld [vmem:[#allocation2 + $0x218] sm:$0xff] }
  0x28   :  { %1875 = vmatpush3.bf16.msra.mxu1 %v1874_v36  ;;  %v328_v36 = vld [vmem:[#allocation2 + $0x1e0] sm:$0xff]  ;;  %v413_v48 = vld [vmem:[#allocation2 + $0x208] sm:$0xff]  ;;  %v414_v49 = vld [vmem:[#allocation2 + $0x210] sm:$0xff] }
  0x29   :  { %1876 = vmatprep.subr.bf16.mxu1 %v2162_v0  ;;  %v1928_v38 = vpack.c.bf16 %v329_v37, %v328_v36  ;;  %v1937_v52 = vpack.c.bf16 %v415_v51, %v414_v49  ;;  %v416_v53 = vld [vmem:[#allocation2 + $0x220] sm:$0xff]  ;;  %v419_v57 = vld [vmem:[#allocation2 + $0x238] sm:$0xff]  ;;  %v421_v60 = vld [vmem:[#allocation2 + $0x248] sm:$0xff] }
  0x2a   :  { %1854 = vmatpush3.bf16.msra.mxu0 %v1853_v33  ;;  %v326_v33 = vld [vmem:[#allocation2 + $0x1d0] sm:$0xff]  ;;  %v423_v63 = vld [vmem:[#allocation2 + $0x258] sm:$0xff]  ;;  %v425_v4 = vld [vmem:[#allocation2 + $0x268] sm:$0xff] }
  0x2b   :  { %1855 = vmatprep.subr.bf16.mxu0 %v2162_v0  ;;  %v1925_v35 = vpack.c.bf16 %v327_v34, %v326_v33  ;;  %v509_v15 = vld [vmem:[#allocation2 + $0x288] sm:$0xff]  ;;  %v510_v16 = vld [vmem:[#allocation2 + $0x290] sm:$0xff]  ;;  %v511_v18 = vld [vmem:[#allocation2 + $0x298] sm:$0xff] }
  0x2c   :  { %1878 = vmatpush3.bf16.msra.mxu1 %v1877_v42  ;;  %v1961_v19 = vpack.c.bf16 %v511_v18, %v510_v16  ;;  %v512_v20 = vld [vmem:[#allocation2 + $0x2a0] sm:$0xff]  ;;  %v515_v24 = vld [vmem:[#allocation2 + $0x2b8] sm:$0xff]  ;;  %v517_v27 = vld [vmem:[#allocation2 + $0x2c8] sm:$0xff] }
  0x2d   :  { %1879 = vmatprep.subr.bf16.mxu1 %v2162_v0  ;;  %v519_v30 = vld [vmem:[#allocation2 + $0x2d8] sm:$0xff]  ;;  %v521_v33 = vld [vmem:[#allocation2 + $0x2e8] sm:$0xff]  ;;  %v608_v49 = vld [vmem:[#allocation2 + $0x320] sm:$0xff] }
  0x2e   :  { %1857 = vmatpush3.bf16.msra.mxu0 %v1856_v39  ;;  %v1192_v39 = vld [vmem:[%s2361_s2 + $0x1] ss:$0 sm:$0xff]  ;;  %v704_v16 = vld [vmem:[#allocation2 + $0x3a0] sm:$0xff] }
  0x2f   :  { %1858 = vmatprep.subr.bf16.mxu0 %v2162_v0 }
  0x30   :  { %1881 = vmatpush3.bf16.msra.mxu1 %v1880_v46 }
  0x31   :  { %1882 = vmatprep.subr.bf16.mxu1 %v2162_v0 }
  0x32   :  { %1860 = vmatpush3.bf16.msra.mxu0 %v1859_v45  ;;  %v331_v45 = vld [vmem:[#allocation2 + $0x1f8] sm:$0xff] }
  0x33   :  { %1885 = vmatprep.subr.bf16.mxu0 %v2162_v0  ;;  %v1931_v46 = vpack.c.bf16 %v331_v45, %v330_v44  ;;  %v605_v44 = vld [vmem:[#allocation2 + $0x308] sm:$0xff]  ;;  %v606_v45 = vld [vmem:[#allocation2 + $0x310] sm:$0xff] }
  0x34   :  { %1884 = vmatpush3.bf16.msra.mxu1 %v1883_v50 }
  0x35   :  { %1450 = vmatmul.mubr.f32.vlgmr.msra.gmra.mrb[0].mxu0 %v28_v47  ;;  %1909 = vmatprep.subr.bf16.mxu1 %v2162_v0  ;;  %v412_v47 = vld [vmem:[#allocation2 + $0x200] sm:$0xff] }
  0x36   :  { %1519 = vmatprep.mubr.msk.f32.mxu0 %vm2163_vm0, %v2164_v1  ;;  %1887 = vmatpush3.bf16.msra.mxu0 %v1886_v54  ;;  %v1934_v50 = vpack.c.bf16 %v413_v48, %v412_v47  ;;  %v417_v54 = vld [vmem:[#allocation2 + $0x228] sm:$0xff]  ;;  %v607_v47 = vld [vmem:[#allocation2 + $0x318] sm:$0xff] }
  0x37   :  { %1888 = vmatprep.subr.bf16.mxu0 %v2162_v0  ;;  %v1940_v55 = vpack.c.bf16 %v417_v54, %v416_v53  ;;  %v1985_v48 = vpack.c.bf16 %v607_v47, %v606_v45  ;;  %v611_v53 = vld [vmem:[#allocation2 + $0x338] sm:$0xff]  ;;  %v800_v45 = vld [vmem:[#allocation2 + $0x420] sm:$0xff] }
  0x3a   :  { %1890 = vmatpush3.bf16.msra.mxu0 %v1889_v56  ;;  %v418_v56 = vld [vmem:[#allocation2 + $0x230] sm:$0xff] }
  0x3b   :  { %1891 = vmatprep.subr.bf16.mxu0 %v2162_v0  ;;  %v1943_v58 = vpack.c.bf16 %v419_v57, %v418_v56  ;;  %v613_v56 = vld [vmem:[#allocation2 + $0x348] sm:$0xff] }
  0x3e   :  { %1893 = vmatpush3.bf16.msra.mxu0 %v1892_v59  ;;  %v420_v59 = vld [vmem:[#allocation2 + $0x240] sm:$0xff] }
  0x3f   :  { %1894 = vmatprep.subr.bf16.mxu0 %v2162_v0  ;;  %v1946_v61 = vpack.c.bf16 %v421_v60, %v420_v59  ;;  %v615_v59 = vld [vmem:[#allocation2 + $0x358] sm:$0xff] }
  0x42   :  { %1896 = vmatpush3.bf16.msra.mxu0 %v1895_v62  ;;  %v422_v62 = vld [vmem:[#allocation2 + $0x250] sm:$0xff] }
  0x43   :  { %1897 = vmatprep.subr.bf16.mxu0 %v2162_v0  ;;  %v1949_v2 = vpack.c.bf16 %v423_v63, %v422_v62  ;;  %v617_v62 = vld [vmem:[#allocation2 + $0x368] sm:$0xff] }
  0x46   :  { %1899 = vmatpush3.bf16.msra.mxu0 %v1898_v3  ;;  %v424_v3 = vld [vmem:[#allocation2 + $0x260] sm:$0xff] }
  0x47   :  { %1900 = vmatprep.subr.bf16.mxu0 %v2162_v0  ;;  %v1952_v5 = vpack.c.bf16 %v425_v4, %v424_v3 }
  0x4a   :  { %1902 = vmatpush3.bf16.msra.mxu0 %v1901_v6  ;;  %v1194_v6 = vld [vmem:[%s2361_s2 + $0x2] ss:$0 sm:$0xff] }
  0x4b   :  { %1903 = vmatprep.subr.bf16.mxu0 %v2162_v0 }
  0x4e   :  { %1905 = vmatpush3.bf16.msra.mxu0 %v1904_v9 }
  0x4f   :  { %1906 = vmatprep.subr.bf16.mxu0 %v2162_v0 }
  0x52   :  { %1908 = vmatpush3.bf16.msra.mxu0 %v1907_v17 }
  0x53   :  { %1933 = vmatprep.subr.bf16.mxu0 %v2162_v0 }
 0x108   :  { %v118_v11 = vpop.f32.mrb[0].mxu0 }
 0x109   :  { %v119_v12 = vadd.f32 %v1190_v10, %v118_v11  ;;  %v1451_v13 = vpop.f32.mrb[1].mxu0  ;;  %v426_v11 = vld [vmem:[#allocation2 + $0x270] sm:$0xff] }
 0x10b   :  { %v122_v14 = vmax.f32 %v119_v12, 0.0  ;;  %v427_v12 = vld [vmem:[#allocation2 + $0x278] sm:$0xff] }
 0x10c   :  { %v1955_v13 = vpack.c.bf16 %v427_v12, %v426_v11  ;;  %v701_v11 = vld [vmem:[#allocation2 + $0x388] sm:$0xff]  ;;  %v702_v12 = vld [vmem:[#allocation2 + $0x390] sm:$0xff] }
 0x10d   :  { %1485 = vmatmul.mubr.f32.vlgmr.msra.gmra.mrb[0].mxu1 %v122_v14  ;;  %v508_v14 = vld [vmem:[#allocation2 + $0x280] sm:$0xff] }
 0x10e   :  { %1554 = vmatprep.mubr.msk.f32.mxu1 %vm2163_vm0, %v2164_v1  ;;  %1911 = vmatpush3.bf16.msra.mxu1 %v1910_v21  ;;  %v1958_v17 = vpack.c.bf16 %v509_v15, %v508_v14  ;;  %v513_v21 = vld [vmem:[#allocation2 + $0x2a8] sm:$0xff]  ;;  %v703_v14 = vld [vmem:[#allocation2 + $0x398] sm:$0xff] }
 0x10f   :  { %1912 = vmatprep.subr.bf16.mxu1 %v2162_v0  ;;  %v1964_v22 = vpack.c.bf16 %v513_v21, %v512_v20  ;;  %v2009_v15 = vpack.c.bf16 %v703_v14, %v702_v12  ;;  %v707_v20 = vld [vmem:[#allocation2 + $0x3b8] sm:$0xff]  ;;  %v896_v12 = vld [vmem:[#allocation2 + $0x4a0] sm:$0xff] }
 0x112   :  { %1914 = vmatpush3.bf16.msra.mxu1 %v1913_v23  ;;  %v514_v23 = vld [vmem:[#allocation2 + $0x2b0] sm:$0xff] }
 0x113   :  { %1915 = vmatprep.subr.bf16.mxu1 %v2162_v0  ;;  %v1967_v25 = vpack.c.bf16 %v515_v24, %v514_v23  ;;  %v709_v23 = vld [vmem:[#allocation2 + $0x3c8] sm:$0xff] }
 0x116   :  { %1917 = vmatpush3.bf16.msra.mxu1 %v1916_v26  ;;  %v516_v26 = vld [vmem:[#allocation2 + $0x2c0] sm:$0xff] }
 0x117   :  { %1918 = vmatprep.subr.bf16.mxu1 %v2162_v0  ;;  %v1970_v28 = vpack.c.bf16 %v517_v27, %v516_v26  ;;  %v711_v26 = vld [vmem:[#allocation2 + $0x3d8] sm:$0xff] }
 0x11a   :  { %1920 = vmatpush3.bf16.msra.mxu1 %v1919_v29  ;;  %v518_v29 = vld [vmem:[#allocation2 + $0x2d0] sm:$0xff] }
 0x11b   :  { %1921 = vmatprep.subr.bf16.mxu1 %v2162_v0  ;;  %v1973_v31 = vpack.c.bf16 %v519_v30, %v518_v29  ;;  %v713_v29 = vld [vmem:[#allocation2 + $0x3e8] sm:$0xff] }
 0x11e   :  { %1923 = vmatpush3.bf16.msra.mxu1 %v1922_v32  ;;  %v520_v32 = vld [vmem:[#allocation2 + $0x2e0] sm:$0xff] }
 0x11f   :  { %1924 = vmatprep.subr.bf16.mxu1 %v2162_v0  ;;  %v1976_v34 = vpack.c.bf16 %v521_v33, %v520_v32 }
 0x122   :  { %1926 = vmatpush3.bf16.msra.mxu1 %v1925_v35  ;;  %v1196_v35 = vld [vmem:[%s2361_s2 + $0x3] ss:$0 sm:$0xff] }
 0x123   :  { %1927 = vmatprep.subr.bf16.mxu1 %v2162_v0 }
 0x126   :  { %1929 = vmatpush3.bf16.msra.mxu1 %v1928_v38 }
 0x127   :  { %1930 = vmatprep.subr.bf16.mxu1 %v2162_v0 }
 0x12a   :  { %1932 = vmatpush3.bf16.msra.mxu1 %v1931_v46 }
 0x12b   :  { %1957 = vmatprep.subr.bf16.mxu1 %v2162_v0 }
 0x1e0   :  { %v214_v40 = vpop.f32.mrb[0].mxu1 }
 0x1e1   :  { %v215_v41 = vadd.f32 %v1192_v39, %v214_v40  ;;  %v1486_v42 = vpop.f32.mrb[1].mxu1  ;;  %v522_v40 = vld [vmem:[#allocation2 + $0x2f0] sm:$0xff] }
 0x1e3   :  { %v218_v43 = vmax.f32 %v215_v41, 0.0  ;;  %v523_v41 = vld [vmem:[#allocation2 + $0x2f8] sm:$0xff] }
 0x1e4   :  { %v1979_v42 = vpack.c.bf16 %v523_v41, %v522_v40  ;;  %v797_v40 = vld [vmem:[#allocation2 + $0x408] sm:$0xff]  ;;  %v798_v41 = vld [vmem:[#allocation2 + $0x410] sm:$0xff] }
 0x1e5   :  { %1520 = vmatmul.mubr.f32.vlgmr.msra.gmra.mrb[2].mxu0 %v218_v43  ;;  %v604_v43 = vld [vmem:[#allocation2 + $0x300] sm:$0xff] }
 0x1e6   :  { %1589 = vmatprep.mubr.msk.f32.mxu0 %vm2163_vm0, %v2164_v1  ;;  %1935 = vmatpush3.bf16.msra.mxu0 %v1934_v50  ;;  %v1982_v46 = vpack.c.bf16 %v605_v44, %v604_v43  ;;  %v609_v50 = vld [vmem:[#allocation2 + $0x328] sm:$0xff]  ;;  %v799_v43 = vld [vmem:[#allocation2 + $0x418] sm:$0xff] }
 0x1e7   :  { %1936 = vmatprep.subr.bf16.mxu0 %v2162_v0  ;;  %v1988_v51 = vpack.c.bf16 %v609_v50, %v608_v49  ;;  %v2033_v44 = vpack.c.bf16 %v799_v43, %v798_v41  ;;  %v803_v49 = vld [vmem:[#allocation2 + $0x438] sm:$0xff]  ;;  %v992_v41 = vld [vmem:[#allocation2 + $0x520] sm:$0xff] }
 0x1ea   :  { %1938 = vmatpush3.bf16.msra.mxu0 %v1937_v52  ;;  %v610_v52 = vld [vmem:[#allocation2 + $0x330] sm:$0xff] }
 0x1eb   :  { %1939 = vmatprep.subr.bf16.mxu0 %v2162_v0  ;;  %v1991_v54 = vpack.c.bf16 %v611_v53, %v610_v52  ;;  %v805_v52 = vld [vmem:[#allocation2 + $0x448] sm:$0xff] }
 0x1ee   :  { %1941 = vmatpush3.bf16.msra.mxu0 %v1940_v55  ;;  %v612_v55 = vld [vmem:[#allocation2 + $0x340] sm:$0xff] }
 0x1ef   :  { %1942 = vmatprep.subr.bf16.mxu0 %v2162_v0  ;;  %v1994_v57 = vpack.c.bf16 %v613_v56, %v612_v55  ;;  %v807_v55 = vld [vmem:[#allocation2 + $0x458] sm:$0xff] }
 0x1f2   :  { %1944 = vmatpush3.bf16.msra.mxu0 %v1943_v58  ;;  %v614_v58 = vld [vmem:[#allocation2 + $0x350] sm:$0xff] }
 0x1f3   :  { %1945 = vmatprep.subr.bf16.mxu0 %v2162_v0  ;;  %v1997_v60 = vpack.c.bf16 %v615_v59, %v614_v58  ;;  %v809_v58 = vld [vmem:[#allocation2 + $0x468] sm:$0xff] }
 0x1f6   :  { %1947 = vmatpush3.bf16.msra.mxu0 %v1946_v61  ;;  %v616_v61 = vld [vmem:[#allocation2 + $0x360] sm:$0xff] }
 0x1f7   :  { %1948 = vmatprep.subr.bf16.mxu0 %v2162_v0  ;;  %v2000_v63 = vpack.c.bf16 %v617_v62, %v616_v61 }
 0x1fa   :  { %1950 = vmatpush3.bf16.msra.mxu0 %v1949_v2  ;;  %v1198_v2 = vld [vmem:[%s2361_s2 + $0x4] ss:$0 sm:$0xff] }
 0x1fb   :  { %1951 = vmatprep.subr.bf16.mxu0 %v2162_v0 }
 0x1fe   :  { %1953 = vmatpush3.bf16.msra.mxu0 %v1952_v5 }
 0x1ff   :  { %1954 = vmatprep.subr.bf16.mxu0 %v2162_v0 }
 0x202   :  { %1956 = vmatpush3.bf16.msra.mxu0 %v1955_v13 }
 0x203   :  { %1981 = vmatprep.subr.bf16.mxu0 %v2162_v0 }
 0x2b8   :  { %v310_v7 = vpop.f32.mrb[2].mxu0 }
 0x2b9   :  { %v311_v8 = vadd.f32 %v1194_v6, %v310_v7  ;;  %v1521_v9 = vpop.f32.mrb[3].mxu0  ;;  %v618_v7 = vld [vmem:[#allocation2 + $0x370] sm:$0xff] }
 0x2bb   :  { %v314_v10 = vmax.f32 %v311_v8, 0.0  ;;  %v619_v8 = vld [vmem:[#allocation2 + $0x378] sm:$0xff] }
 0x2bc   :  { %v2003_v9 = vpack.c.bf16 %v619_v8, %v618_v7  ;;  %v893_v7 = vld [vmem:[#allocation2 + $0x488] sm:$0xff]  ;;  %v894_v8 = vld [vmem:[#allocation2 + $0x490] sm:$0xff] }
 0x2bd   :  { %1555 = vmatmul.mubr.f32.vlgmr.msra.gmra.mrb[2].mxu1 %v314_v10  ;;  %v700_v10 = vld [vmem:[#allocation2 + $0x380] sm:$0xff] }
 0x2be   :  { %1624 = vmatprep.mubr.msk.f32.mxu1 %vm2163_vm0, %v2164_v1  ;;  %1959 = vmatpush3.bf16.msra.mxu1 %v1958_v17  ;;  %v2006_v13 = vpack.c.bf16 %v701_v11, %v700_v10  ;;  %v705_v17 = vld [vmem:[#allocation2 + $0x3a8] sm:$0xff]  ;;  %v895_v10 = vld [vmem:[#allocation2 + $0x498] sm:$0xff] }
 0x2bf   :  { %1960 = vmatprep.subr.bf16.mxu1 %v2162_v0  ;;  %v2012_v18 = vpack.c.bf16 %v705_v17, %v704_v16  ;;  %v2057_v11 = vpack.c.bf16 %v895_v10, %v894_v8  ;;  %v899_v16 = vld [vmem:[#allocation2 + $0x4b8] sm:$0xff]  ;;  %v1088_v8 = vld [vmem:[#allocation2 + $0x5a0] sm:$0xff] }
 0x2c2   :  { %1962 = vmatpush3.bf16.msra.mxu1 %v1961_v19  ;;  %v706_v19 = vld [vmem:[#allocation2 + $0x3b0] sm:$0xff] }
 0x2c3   :  { %1963 = vmatprep.subr.bf16.mxu1 %v2162_v0  ;;  %v2015_v21 = vpack.c.bf16 %v707_v20, %v706_v19  ;;  %v901_v19 = vld [vmem:[#allocation2 + $0x4c8] sm:$0xff] }
 0x2c6   :  { %1965 = vmatpush3.bf16.msra.mxu1 %v1964_v22  ;;  %v708_v22 = vld [vmem:[#allocation2 + $0x3c0] sm:$0xff] }
 0x2c7   :  { %1966 = vmatprep.subr.bf16.mxu1 %v2162_v0  ;;  %v2018_v24 = vpack.c.bf16 %v709_v23, %v708_v22  ;;  %v903_v22 = vld [vmem:[#allocation2 + $0x4d8] sm:$0xff] }
 0x2ca   :  { %1968 = vmatpush3.bf16.msra.mxu1 %v1967_v25  ;;  %v710_v25 = vld [vmem:[#allocation2 + $0x3d0] sm:$0xff] }
 0x2cb   :  { %1969 = vmatprep.subr.bf16.mxu1 %v2162_v0  ;;  %v2021_v27 = vpack.c.bf16 %v711_v26, %v710_v25  ;;  %v905_v25 = vld [vmem:[#allocation2 + $0x4e8] sm:$0xff] }
 0x2ce   :  { %1971 = vmatpush3.bf16.msra.mxu1 %v1970_v28  ;;  %v712_v28 = vld [vmem:[#allocation2 + $0x3e0] sm:$0xff] }
 0x2cf   :  { %1972 = vmatprep.subr.bf16.mxu1 %v2162_v0  ;;  %v2024_v30 = vpack.c.bf16 %v713_v29, %v712_v28 }
 0x2d2   :  { %1974 = vmatpush3.bf16.msra.mxu1 %v1973_v31  ;;  %v1200_v31 = vld [vmem:[%s2361_s2 + $0x5] ss:$0 sm:$0xff] }
 0x2d3   :  { %1975 = vmatprep.subr.bf16.mxu1 %v2162_v0 }
 0x2d6   :  { %1977 = vmatpush3.bf16.msra.mxu1 %v1976_v34 }
 0x2d7   :  { %1978 = vmatprep.subr.bf16.mxu1 %v2162_v0 }
 0x2da   :  { %1980 = vmatpush3.bf16.msra.mxu1 %v1979_v42 }
 0x2db   :  { %2005 = vmatprep.subr.bf16.mxu1 %v2162_v0 }
 0x390   :  { %v406_v36 = vpop.f32.mrb[2].mxu1 }
 0x391   :  { %v407_v37 = vadd.f32 %v1196_v35, %v406_v36  ;;  %v1556_v38 = vpop.f32.mrb[3].mxu1  ;;  %v714_v36 = vld [vmem:[#allocation2 + $0x3f0] sm:$0xff] }
 0x393   :  { %v410_v39 = vmax.f32 %v407_v37, 0.0  ;;  %v715_v37 = vld [vmem:[#allocation2 + $0x3f8] sm:$0xff] }
 0x394   :  { %v2027_v38 = vpack.c.bf16 %v715_v37, %v714_v36  ;;  %v989_v36 = vld [vmem:[#allocation2 + $0x508] sm:$0xff]  ;;  %v990_v37 = vld [vmem:[#allocation2 + $0x510] sm:$0xff] }
 0x395   :  { %1590 = vmatmul.mubr.f32.vlgmr.msra.gmra.mrb[4].mxu0 %v410_v39  ;;  %v796_v39 = vld [vmem:[#allocation2 + $0x400] sm:$0xff] }
 0x396   :  { %1659 = vmatprep.mubr.msk.f32.mxu0 %vm2163_vm0, %v2164_v1  ;;  %1983 = vmatpush3.bf16.msra.mxu0 %v1982_v46  ;;  %v2030_v42 = vpack.c.bf16 %v797_v40, %v796_v39  ;;  %v801_v46 = vld [vmem:[#allocation2 + $0x428] sm:$0xff]  ;;  %v991_v39 = vld [vmem:[#allocation2 + $0x518] sm:$0xff] }
 0x397   :  { %1984 = vmatprep.subr.bf16.mxu0 %v2162_v0  ;;  %v2036_v47 = vpack.c.bf16 %v801_v46, %v800_v45  ;;  %v2081_v40 = vpack.c.bf16 %v991_v39, %v990_v37  ;;  %v995_v45 = vld [vmem:[#allocation2 + $0x538] sm:$0xff] }
 0x39a   :  { %1986 = vmatpush3.bf16.msra.mxu0 %v1985_v48  ;;  %v802_v48 = vld [vmem:[#allocation2 + $0x430] sm:$0xff] }
 0x39b   :  { %1987 = vmatprep.subr.bf16.mxu0 %v2162_v0  ;;  %v2039_v50 = vpack.c.bf16 %v803_v49, %v802_v48  ;;  %v997_v48 = vld [vmem:[#allocation2 + $0x548] sm:$0xff] }
 0x39e   :  { %1989 = vmatpush3.bf16.msra.mxu0 %v1988_v51  ;;  %v804_v51 = vld [vmem:[#allocation2 + $0x440] sm:$0xff] }
 0x39f   :  { %1990 = vmatprep.subr.bf16.mxu0 %v2162_v0  ;;  %v2042_v53 = vpack.c.bf16 %v805_v52, %v804_v51  ;;  %v999_v51 = vld [vmem:[#allocation2 + $0x558] sm:$0xff] }
 0x3a2   :  { %1992 = vmatpush3.bf16.msra.mxu0 %v1991_v54  ;;  %v806_v54 = vld [vmem:[#allocation2 + $0x450] sm:$0xff] }
 0x3a3   :  { %1993 = vmatprep.subr.bf16.mxu0 %v2162_v0  ;;  %v2045_v56 = vpack.c.bf16 %v807_v55, %v806_v54  ;;  %v1001_v54 = vld [vmem:[#allocation2 + $0x568] sm:$0xff] }
 0x3a6   :  { %1995 = vmatpush3.bf16.msra.mxu0 %v1994_v57  ;;  %v808_v57 = vld [vmem:[#allocation2 + $0x460] sm:$0xff] }
 0x3a7   :  { %1996 = vmatprep.subr.bf16.mxu0 %v2162_v0  ;;  %v2048_v59 = vpack.c.bf16 %v809_v58, %v808_v57 }
 0x3aa   :  { %1998 = vmatpush3.bf16.msra.mxu0 %v1997_v60  ;;  %v1202_v60 = vld [vmem:[%s2361_s2 + $0x6] ss:$0 sm:$0xff] }
 0x3ab   :  { %1999 = vmatprep.subr.bf16.mxu0 %v2162_v0 }
 0x3ae   :  { %2001 = vmatpush3.bf16.msra.mxu0 %v2000_v63 }
 0x3af   :  { %2002 = vmatprep.subr.bf16.mxu0 %v2162_v0 }
 0x3b2   :  { %2004 = vmatpush3.bf16.msra.mxu0 %v2003_v9 }
 0x3b3   :  { %2029 = vmatprep.subr.bf16.mxu0 %v2162_v0 }
 0x468   :  { %v502_v3 = vpop.f32.mrb[4].mxu0 }
 0x469   :  { %v503_v4 = vadd.f32 %v1198_v2, %v502_v3  ;;  %v1591_v5 = vpop.f32.mrb[5].mxu0  ;;  %v810_v3 = vld [vmem:[#allocation2 + $0x470] sm:$0xff] }
 0x46b   :  { %v506_v6 = vmax.f32 %v503_v4, 0.0  ;;  %v811_v4 = vld [vmem:[#allocation2 + $0x478] sm:$0xff] }
 0x46c   :  { %v2051_v5 = vpack.c.bf16 %v811_v4, %v810_v3  ;;  %v1085_v3 = vld [vmem:[#allocation2 + $0x588] sm:$0xff]  ;;  %v1086_v4 = vld [vmem:[#allocation2 + $0x590] sm:$0xff] }
 0x46d   :  { %1625 = vmatmul.mubr.f32.vlgmr.msra.gmra.mrb[4].mxu1 %v506_v6  ;;  %v892_v6 = vld [vmem:[#allocation2 + $0x480] sm:$0xff] }
 0x46e   :  { %1694 = vmatprep.mubr.msk.f32.mxu1 %vm2163_vm0, %v2164_v1  ;;  %2007 = vmatpush3.bf16.msra.mxu1 %v2006_v13  ;;  %v2054_v9 = vpack.c.bf16 %v893_v7, %v892_v6  ;;  %v897_v13 = vld [vmem:[#allocation2 + $0x4a8] sm:$0xff]  ;;  %v1087_v6 = vld [vmem:[#allocation2 + $0x598] sm:$0xff] }
 0x46f   :  { %2008 = vmatprep.subr.bf16.mxu1 %v2162_v0  ;;  %v2060_v14 = vpack.c.bf16 %v897_v13, %v896_v12  ;;  %v2105_v7 = vpack.c.bf16 %v1087_v6, %v1086_v4  ;;  %v1092_v13 = vld [vmem:[#allocation2 + $0x5c0] sm:$0xff] }
 0x472   :  { %2010 = vmatpush3.bf16.msra.mxu1 %v2009_v15  ;;  %v898_v15 = vld [vmem:[#allocation2 + $0x4b0] sm:$0xff] }
 0x473   :  { %2011 = vmatprep.subr.bf16.mxu1 %v2162_v0  ;;  %v2063_v17 = vpack.c.bf16 %v899_v16, %v898_v15  ;;  %v1094_v16 = vld [vmem:[#allocation2 + $0x5d0] sm:$0xff] }
 0x476   :  { %2013 = vmatpush3.bf16.msra.mxu1 %v2012_v18  ;;  %v900_v18 = vld [vmem:[#allocation2 + $0x4c0] sm:$0xff] }
 0x477   :  { %2014 = vmatprep.subr.bf16.mxu1 %v2162_v0  ;;  %v2066_v20 = vpack.c.bf16 %v901_v19, %v900_v18  ;;  %v1096_v19 = vld [vmem:[#allocation2 + $0x5e0] sm:$0xff] }
 0x47a   :  { %2016 = vmatpush3.bf16.msra.mxu1 %v2015_v21  ;;  %v902_v21 = vld [vmem:[#allocation2 + $0x4d0] sm:$0xff] }
 0x47b   :  { %2017 = vmatprep.subr.bf16.mxu1 %v2162_v0  ;;  %v2069_v23 = vpack.c.bf16 %v903_v22, %v902_v21  ;;  %v1208_v22 = vld [vmem:[%s2361_s2 + $0x9] ss:$0 sm:$0xff] }
 0x47e   :  { %2019 = vmatpush3.bf16.msra.mxu1 %v2018_v24  ;;  %v904_v24 = vld [vmem:[#allocation2 + $0x4e0] sm:$0xff] }
 0x47f   :  { %2020 = vmatprep.subr.bf16.mxu1 %v2162_v0  ;;  %v2072_v26 = vpack.c.bf16 %v905_v25, %v904_v24 }
 0x482   :  { %2022 = vmatpush3.bf16.msra.mxu1 %v2021_v27  ;;  %v1204_v27 = vld [vmem:[%s2361_s2 + $0x7] ss:$0 sm:$0xff] }
 0x483   :  { %2023 = vmatprep.subr.bf16.mxu1 %v2162_v0 }
 0x486   :  { %2025 = vmatpush3.bf16.msra.mxu1 %v2024_v30 }
 0x487   :  { %2026 = vmatprep.subr.bf16.mxu1 %v2162_v0 }
 0x48a   :  { %2028 = vmatpush3.bf16.msra.mxu1 %v2027_v38 }
 0x48b   :  { %2053 = vmatprep.subr.bf16.mxu1 %v2162_v0 }
 0x540   :  { %v598_v32 = vpop.f32.mrb[4].mxu1 }
 0x541   :  { %v599_v33 = vadd.f32 %v1200_v31, %v598_v32  ;;  %v1626_v34 = vpop.f32.mrb[5].mxu1  ;;  %v906_v32 = vld [vmem:[#allocation2 + $0x4f0] sm:$0xff] }
 0x543   :  { %v602_v35 = vmax.f32 %v599_v33, 0.0  ;;  %v907_v33 = vld [vmem:[#allocation2 + $0x4f8] sm:$0xff] }
 0x544   :  { %v2075_v34 = vpack.c.bf16 %v907_v33, %v906_v32 }
 0x545   :  { %1660 = vmatmul.mubr.f32.vlgmr.msra.gmra.mrb[6].mxu0 %v602_v35  ;;  %v988_v35 = vld [vmem:[#allocation2 + $0x500] sm:$0xff] }
 0x546   :  { %1729 = vmatprep.mubr.msk.f32.mxu0 %vm2163_vm0, %v2164_v1  ;;  %2031 = vmatpush3.bf16.msra.mxu0 %v2030_v42  ;;  %v2078_v38 = vpack.c.bf16 %v989_v36, %v988_v35  ;;  %v993_v42 = vld [vmem:[#allocation2 + $0x528] sm:$0xff] }
 0x547   :  { %2032 = vmatprep.subr.bf16.mxu0 %v2162_v0  ;;  %v2084_v43 = vpack.c.bf16 %v993_v42, %v992_v41 }
 0x54a   :  { %2034 = vmatpush3.bf16.msra.mxu0 %v2033_v44  ;;  %v994_v44 = vld [vmem:[#allocation2 + $0x530] sm:$0xff] }
 0x54b   :  { %2035 = vmatprep.subr.bf16.mxu0 %v2162_v0  ;;  %v2087_v46 = vpack.c.bf16 %v995_v45, %v994_v44 }
 0x54e   :  { %2037 = vmatpush3.bf16.msra.mxu0 %v2036_v47  ;;  %v996_v47 = vld [vmem:[#allocation2 + $0x540] sm:$0xff] }
 0x54f   :  { %2038 = vmatprep.subr.bf16.mxu0 %v2162_v0  ;;  %v2090_v49 = vpack.c.bf16 %v997_v48, %v996_v47 }
 0x552   :  { %2040 = vmatpush3.bf16.msra.mxu0 %v2039_v50  ;;  %v998_v50 = vld [vmem:[#allocation2 + $0x550] sm:$0xff] }
 0x553   :  { %2041 = vmatprep.subr.bf16.mxu0 %v2162_v0  ;;  %v2093_v52 = vpack.c.bf16 %v999_v51, %v998_v50 }
 0x556   :  { %2043 = vmatpush3.bf16.msra.mxu0 %v2042_v53  ;;  %v1000_v53 = vld [vmem:[#allocation2 + $0x560] sm:$0xff] }
 0x557   :  { %2044 = vmatprep.subr.bf16.mxu0 %v2162_v0  ;;  %v2096_v55 = vpack.c.bf16 %v1001_v54, %v1000_v53 }
 0x55a   :  { %2046 = vmatpush3.bf16.msra.mxu0 %v2045_v56  ;;  %v1206_v56 = vld [vmem:[%s2361_s2 + $0x8] ss:$0 sm:$0xff] }
 0x55b   :  { %2047 = vmatprep.subr.bf16.mxu0 %v2162_v0 }
 0x55e   :  { %2049 = vmatpush3.bf16.msra.mxu0 %v2048_v59 }
 0x55f   :  { %2050 = vmatprep.subr.bf16.mxu0 %v2162_v0 }
 0x562   :  { %2052 = vmatpush3.bf16.msra.mxu0 %v2051_v5 }
 0x563   :  { %2077 = vmatprep.subr.bf16.mxu0 %v2162_v0 }
 0x618   :  { %v694_v61 = vpop.f32.mrb[6].mxu0 }
 0x619   :  { %v695_v62 = vadd.f32 %v1202_v60, %v694_v61  ;;  %v1661_v63 = vpop.f32.mrb[7].mxu0  ;;  %v1002_v61 = vld [vmem:[#allocation2 + $0x570] sm:$0xff] }
 0x61b   :  { %v698_v2 = vmax.f32 %v695_v62, 0.0  ;;  %v1003_v62 = vld [vmem:[#allocation2 + $0x578] sm:$0xff] }
 0x61c   :  { %v2099_v63 = vpack.c.bf16 %v1003_v62, %v1002_v61 }
 0x61d   :  { %1695 = vmatmul.mubr.f32.vlgmr.msra.gmra.mrb[6].mxu1 %v698_v2  ;;  %v1084_v2 = vld [vmem:[#allocation2 + $0x580] sm:$0xff] }
 0x61e   :  { %1764 = vmatprep.mubr.msk.f32.mxu1 %vm2163_vm0, %v2164_v1  ;;  %2055 = vmatpush3.bf16.msra.mxu1 %v2054_v9  ;;  %v2102_v5 = vpack.c.bf16 %v1085_v3, %v1084_v2  ;;  %v1089_v9 = vld [vmem:[#allocation2 + $0x5a8] sm:$0xff] }
 0x61f   :  { %2056 = vmatprep.subr.bf16.mxu1 %v2162_v0  ;;  %v2108_v10 = vpack.c.bf16 %v1089_v9, %v1088_v8 }
 0x622   :  { %2058 = vmatpush3.bf16.msra.mxu1 %v2057_v11  ;;  %v1091_v11 = vld [vmem:[#allocation2 + $0x5b8] sm:$0xff] }
 0x623   :  { %2059 = vmatprep.subr.bf16.mxu1 %v2162_v0 }
 0x626   :  { %2061 = vmatpush3.bf16.msra.mxu1 %v2060_v14  ;;  %v1093_v14 = vld [vmem:[#allocation2 + $0x5c8] sm:$0xff] }
 0x627   :  { %2062 = vmatprep.subr.bf16.mxu1 %v2162_v0  ;;  %v2114_v15 = vpack.c.bf16 %v1093_v14, %v1092_v13 }
 0x62a   :  { %2064 = vmatpush3.bf16.msra.mxu1 %v2063_v17  ;;  %v1095_v17 = vld [vmem:[#allocation2 + $0x5d8] sm:$0xff] }
 0x62b   :  { %2065 = vmatprep.subr.bf16.mxu1 %v2162_v0  ;;  %v2117_v18 = vpack.c.bf16 %v1095_v17, %v1094_v16 }
 0x62e   :  { %2067 = vmatpush3.bf16.msra.mxu1 %v2066_v20  ;;  %v1097_v20 = vld [vmem:[#allocation2 + $0x5e8] sm:$0xff] }
 0x62f   :  { %2068 = vmatprep.subr.bf16.mxu1 %v2162_v0  ;;  %v2120_v21 = vpack.c.bf16 %v1097_v20, %v1096_v19 }
 0x632   :  { %2070 = vmatpush3.bf16.msra.mxu1 %v2069_v23 }
 0x633   :  { %2071 = vmatprep.subr.bf16.mxu1 %v2162_v0 }
 0x636   :  { %2073 = vmatpush3.bf16.msra.mxu1 %v2072_v26 }
 0x637   :  { %2074 = vmatprep.subr.bf16.mxu1 %v2162_v0 }
 0x63a   :  { %2076 = vmatpush3.bf16.msra.mxu1 %v2075_v34  ;;  %v1212_v34 = vld [vmem:[%s2361_s2 + $0xb] ss:$0 sm:$0xff] }
 0x63b   :  { %2101 = vmatprep.subr.bf16.mxu1 %v2162_v0 }
 0x6f0   :  { %v790_v28 = vpop.f32.mrb[6].mxu1 }
 0x6f1   :  { %v791_v29 = vadd.f32 %v1204_v27, %v790_v28  ;;  %v1696_v30 = vpop.f32.mrb[7].mxu1  ;;  %v1098_v27 = vld [vmem:[#allocation2 + $0x5f0] sm:$0xff]  ;;  %v1099_v28 = vld [vmem:[#allocation2 + $0x5f8] sm:$0xff] }
 0x6f2   :  { %v1210_v30 = vld [vmem:[%s2361_s2 + $0xa] ss:$0 sm:$0xff] }
 0x6f3   :  { %v794_v31 = vmax.f32 %v791_v29, 0.0  ;;  %v2123_v29 = vpack.c.bf16 %v1099_v28, %v1098_v27 }
 0x6f5   :  { %1730 = vmatmul.mubr.f32.vlgmr.msra.gmra.mrb[8].mxu0 %v794_v31 }
 0x6f6   :  { %1799 = vmatprep.mubr.msk.f32.mxu0 %vm2163_vm0, %v2164_v1  ;;  %2079 = vmatpush3.bf16.msra.mxu0 %v2078_v38 }
 0x6f7   :  { %2080 = vmatprep.subr.bf16.mxu0 %v2162_v0 }
 0x6fa   :  { %2082 = vmatpush3.bf16.msra.mxu0 %v2081_v40 }
 0x6fb   :  { %2083 = vmatprep.subr.bf16.mxu0 %v2162_v0 }
 0x6fe   :  { %2085 = vmatpush3.bf16.msra.mxu0 %v2084_v43 }
 0x6ff   :  { %2086 = vmatprep.subr.bf16.mxu0 %v2162_v0 }
 0x702   :  { %2088 = vmatpush3.bf16.msra.mxu0 %v2087_v46 }
 0x703   :  { %2089 = vmatprep.subr.bf16.mxu0 %v2162_v0 }
 0x706   :  { %2091 = vmatpush3.bf16.msra.mxu0 %v2090_v49 }
 0x707   :  { %2092 = vmatprep.subr.bf16.mxu0 %v2162_v0 }
 0x70a   :  { %2094 = vmatpush3.bf16.msra.mxu0 %v2093_v52 }
 0x70b   :  { %2095 = vmatprep.subr.bf16.mxu0 %v2162_v0 }
 0x70e   :  { %2097 = vmatpush3.bf16.msra.mxu0 %v2096_v55 }
 0x70f   :  { %2098 = vmatprep.subr.bf16.mxu0 %v2162_v0 }
 0x712   :  { %2100 = vmatpush3.bf16.msra.mxu0 %v2099_v63 }
 0x7c8   :  { %v886_v57 = vpop.f32.mrb[8].mxu0 }
 0x7c9   :  { %v887_v58 = vadd.f32 %v1206_v56, %v886_v57  ;;  %v1731_v59 = vpop.f32.mrb[9].mxu0 }
 0x7cb   :  { %v890_v60 = vmax.f32 %v887_v58, 0.0 }
 0x7cd   :  { %1765 = vmatmul.mubr.f32.vlgmr.msra.gmra.mrb[8].mxu1 %v890_v60 }
 0x7ce   :  { %1834 = vmatprep.mubr.msk.f32.mxu1 %vm2163_vm0, %v2164_v1  ;;  %2103 = vmatpush3.bf16.msra.mxu1 %v2102_v5  ;;  %v1090_v1 = vld [vmem:[#allocation2 + $0x5b0] sm:$0xff] }
 0x7cf   :  { %2104 = vmatprep.subr.bf16.mxu1 %v2162_v0  ;;  %v2111_v12 = vpack.c.bf16 %v1091_v11, %v1090_v1 }
 0x7d2   :  { %2106 = vmatpush3.bf16.msra.mxu1 %v2105_v7 }
 0x7d3   :  { %2107 = vmatprep.subr.bf16.mxu1 %v2162_v0 }
 0x7d6   :  { %2109 = vmatpush3.bf16.msra.mxu1 %v2108_v10 }
 0x7d7   :  { %2110 = vmatprep.subr.bf16.mxu1 %v2162_v0 }
 0x7da   :  { %2112 = vmatpush3.bf16.msra.mxu1 %v2111_v12 }
 0x7db   :  { %2113 = vmatprep.subr.bf16.mxu1 %v2162_v0 }
 0x7de   :  { %2115 = vmatpush3.bf16.msra.mxu1 %v2114_v15 }
 0x7df   :  { %2116 = vmatprep.subr.bf16.mxu1 %v2162_v0 }
 0x7e2   :  { %2118 = vmatpush3.bf16.msra.mxu1 %v2117_v18 }
 0x7e3   :  { %2119 = vmatprep.subr.bf16.mxu1 %v2162_v0 }
 0x7e6   :  { %2121 = vmatpush3.bf16.msra.mxu1 %v2120_v21 }
 0x7e7   :  { %2122 = vmatprep.subr.bf16.mxu1 %v2162_v0 }
 0x7ea   :  { %2124 = vmatpush3.bf16.msra.mxu1 %v2123_v29 }
 0x8a0   :  { %v982_v23 = vpop.f32.mrb[8].mxu1 }
 0x8a1   :  { %v983_v24 = vadd.f32 %v1208_v22, %v982_v23  ;;  %v1766_v25 = vpop.f32.mrb[9].mxu1 }
 0x8a3   :  { %v986_v26 = vmax.f32 %v983_v24, 0.0 }
 0x8a5   :  { %1800 = vmatmul.mubr.f32.vlgmr.msra.gmra.mrb[10].mxu0 %v986_v26 }
 0x978   :  { %v1078_v31 = vpop.f32.mrb[10].mxu0 }
 0x979   :  { %v1079_v32 = vadd.f32 %v1210_v30, %v1078_v31  ;;  %v1801_v0 = vpop.f32.mrb[11].mxu0 }
 0x97b   :  { %v1082_v33 = vmax.f32 %v1079_v32, 0.0 }
 0x97d   :  { %1835 = vmatmul.mubr.f32.vlgmr.msra.gmra.mrb[10].mxu1 %v1082_v33 }
 0xa50   :  { %v1174_v35 = vpop.f32.mrb[10].mxu1 }
 0xa51   :  { %v1175_v36 = vadd.f32 %v1212_v34, %v1174_v35  ;;  %v1836_v37 = vpop.f32.mrb[11].mxu1 }
 0xa53   :  { %v1178_v38 = vsub.f32 0.0, %v1175_v36 }
 0xa55   :  { %v1179_v39 = vmul.f32 1.442695, %v1178_v38 }
 0xa57   :  { %2131 = vpow2.f32 %v1179_v39 }
 0xa61   :  { %v2132_v40 = vpop.eup %2131 }
 0xa62   :  { %v1181_v41 = vadd.f32 1.0, %v2132_v40 }
 0xa64   :  { %2133 = vrcp.f32 %v1181_v41 }
 0xa6e   :  { %v2134_v42 = vpop.eup %2133 }
 0xa6f   :  { %1184 = vst [vmem:[%s2362_s3] sm:$0xff] %v2134_v42 }
 0xa70   :  { %1189 = vsyncpa [#allocation3], 1 }

</bundles_post_ra>
